<compile_context>
chip_gen: v7x
topology: tpu7x:2x2x1
jax: 0.10.0
libtpu: 0.0.40
codegen_flags: <defaults>
</compile_context>

<pallas_src>
import functools
import math

import jax
import jax.numpy as jnp
from jax import lax
from jax.experimental import pallas as pl
from jax.experimental.pallas import tpu as pltpu


# ---------------------------------------------------------------------------
# Per-generation VMEM budgeting
# ---------------------------------------------------------------------------

def _vmem_capacity_bytes():
    """Physical VMEM per TensorCore; conservative 64 MiB (v7x) fallback."""
    try:
        info = pltpu.get_tpu_info()
        cap = getattr(info, "vmem_capacity_bytes", None)
        if cap:
            return int(cap)
    except Exception:
        pass
    return 64 << 20


def _vmem_budgets():
    cap = _vmem_capacity_bytes()
    # Scoped VMEM limit handed to Mosaic: ~48 MiB on v7x, 96 MiB on v5e/v6e.
    vmem_limit = int(min(cap * 3 // 4, 96 << 20))
    # Resident-table cap for the one-hot/MXU path.  The table's index_map is
    # constant but the pipeline still double-buffers it, so it is counted twice
    # in the tile budget below: ~8 MiB on v7x, 16 MiB on v5e/v6e.
    # TODO(synk): pipeline_mode=pl.Buffered(1) on the table BlockSpec would halve
    # that footprint once single-buffered blocks are reliably supported.
    table_budget = int(min(max(cap // 8, 8 << 20), 24 << 20))
    return vmem_limit, table_budget


def _round_up(v, m):
    return ((v + m - 1) // m) * m


def _round8_down(v):
    return max(8, (v // 8) * 8)


# ---------------------------------------------------------------------------
# Path 1: small/medium vocab -> one-hot matmul, table resident in VMEM.
# ---------------------------------------------------------------------------

def _embed_matmul_kernel(ids_ref, table_ref, out_ref, *, scale):
    # ids_ref:   (T, 1)       int32 token ids for this tile (VMEM)
    # table_ref: (vocab, Dp)  embedding table, resident (constant index_map)
    # out_ref:   (T, Dp)      scaled embeddings (Dp = d_model padded to 128)
    ids = ids_ref[...]                                    # (T, 1)
    t = out_ref.shape[0]
    vocab = table_ref.shape[0]
    col = lax.broadcasted_iota(jnp.int32, (t, vocab), 1)
    # sqrt(d_model) folded into the one-hot: exact for f32 tables; for bf16
    # tables `scale` is bf16-rounded (acceptable).
    one_hot = jnp.where(col == ids, scale, 0.0).astype(table_ref.dtype)
    out_ref[...] = jnp.dot(one_hot, table_ref[...],
                           preferred_element_type=jnp.float32
                           ).astype(out_ref.dtype)


def _embed_matmul(ids_flat, table, *, t, scale, vmem_limit):
    n_pad = ids_flat.shape[0]
    vocab, d_pad = table.shape
    return pl.pallas_call(
        functools.partial(_embed_matmul_kernel, scale=scale),
        out_shape=jax.ShapeDtypeStruct((n_pad, d_pad), table.dtype),
        grid_spec=pltpu.PrefetchScalarGridSpec(
            num_scalar_prefetch=0,
            grid=(n_pad // t,),
            in_specs=[
                pl.BlockSpec((t, 1), lambda i: (i, 0)),          # ids tile
                pl.BlockSpec((vocab, d_pad), lambda i: (0, 0)),  # full table
            ],
            out_specs=pl.BlockSpec((t, d_pad), lambda i: (i, 0)),
        ),
        compiler_params=pltpu.CompilerParams(
            dimension_semantics=("parallel",),
            vmem_limit_bytes=vmem_limit),
    )(ids_flat.reshape(n_pad, 1), table)


# ---------------------------------------------------------------------------
# Path 2: large vocab -> scalar-prefetched ids + double-buffered HBM row gather.
# ---------------------------------------------------------------------------

def _embed_gather_kernel(ids_smem, table_hbm, out_ref, rows_vmem, sem, *, scale):
    # ids_smem:  (n_pad,)    int32 token ids in SMEM (scalar prefetch)
    # table_hbm: (vocab, D)  embedding table in HBM (memory_space=ANY)
    # out_ref:   (T, D)      output tile (VMEM)
    # rows_vmem: (2, T, D)   double-buffered gather destination (VMEM scratch)
    # sem:       (2,)        one DMA semaphore per slot
    t, d = out_ref.shape
    pid = pl.program_id(0)
    nprog = pl.num_programs(0)

    def issue_tile(tile_idx):
        """Launch all T row-gather DMAs for `tile_idx` into slot tile_idx % 2."""
        slot = tile_idx % 2
        base = tile_idx * t

        def body(j, carry):
            tok = ids_smem[base + j]
            pltpu.make_async_copy(
                table_hbm.at[pl.ds(tok, 1), :],
                rows_vmem.at[slot, pl.ds(j, 1), :],
                sem.at[slot],
            ).start()
            return carry

        # Unrolled so the LLO scheduler can pack address math with descriptor
        # pushes (descriptor issue is throttled by the vector-misc slot).
        lax.fori_loop(0, t, body, 0, unroll=8)

    # Prime the pipeline at the first grid step.
    @pl.when(pid == 0)
    def _():
        issue_tile(0)

    # Cross-step double buffering: launch tile i+1's gather into the other slot
    # BEFORE draining tile i, so the DMA engine stays busy across steps.
    @pl.when(pid + 1 < nprog)
    def _():
        issue_tile(pid + 1)

    # Single aggregate wait: every row copy has identical size and shares the
    # slot's semaphore (which only tracks bytes), so one (T, D)-sized descriptor
    # drains all T copies -- no per-row SMEM id reads / address math on the
    # wait side.
    slot = pid % 2
    pltpu.make_async_copy(
        table_hbm.at[pl.ds(0, t), :],
        rows_vmem.at[slot],
        sem.at[slot],
    ).wait()

    out_ref[...] = (rows_vmem[slot] * scale).astype(out_ref.dtype)


def _embed_gather(ids_flat, table, *, t, scale, vmem_limit):
    n_pad = ids_flat.shape[0]
    vocab, d_model = table.shape
    return pl.pallas_call(
        functools.partial(_embed_gather_kernel, scale=scale),
        out_shape=jax.ShapeDtypeStruct((n_pad, d_model), table.dtype),
        grid_spec=pltpu.PrefetchScalarGridSpec(
            num_scalar_prefetch=1,                         # ids -> SMEM
            grid=(n_pad // t,),
            in_specs=[pl.BlockSpec(memory_space=pl.ANY)],  # table stays in HBM
            out_specs=pl.BlockSpec((t, d_model), lambda i, ids: (i, 0)),
            scratch_shapes=[
                pltpu.VMEM((2, t, d_model), table.dtype),
                pltpu.SemaphoreType.DMA((2,)),
            ],
        ),
        # "arbitrary": the cross-step prefetch carries state in rows_vmem/sem,
        # so this axis must run sequentially (megacore-splitting it would leave
        # a core's first tile un-issued).
        compiler_params=pltpu.CompilerParams(
            dimension_semantics=("arbitrary",),
            vmem_limit_bytes=vmem_limit),
    )(ids_flat, table)


# ---------------------------------------------------------------------------
# Wrapper
# ---------------------------------------------------------------------------

_MATMUL_MAX_VOCAB = 4096   # one-hot FLOPs / (T, vocab) select stay cheap up to here
# TODO(synk): on v5e the f32 MXU path is decomposed (bf16/int-native), which moves
# the matmul/gather crossover lower; detect chip generation and reduce the cap (or
# build the one-hot in bf16) there.


def embeddings_forward(x, table, *, token_tile=256):
    """Pallas TPU equivalent of `nn.Embedding(vocab, d_model)(x) * sqrt(d_model)`.

    x:     (B, S) integer token ids.
    table: (vocab, d_model) embedding weights.
    Returns (B, S, d_model) in table.dtype.
    """
    b, s = x.shape
    vocab, d_model = table.shape
    scale = float(math.sqrt(d_model))
    itemsize = table.dtype.itemsize

    n = b * s
    # Clamp like jnp's table[x]; PyTorch nn.Embedding would raise on OOB ids.
    ids_flat = jnp.clip(x.reshape(n).astype(jnp.int32), 0, vocab - 1)

    vmem_limit, table_budget = _vmem_budgets()
    table_bytes = vocab * d_model * itemsize
    use_matmul = vocab <= _MATMUL_MAX_VOCAB and table_bytes <= table_budget

    if use_matmul:
        # Lane-dense output blocks: pad d_model up to a multiple of 128 (the
        # table is small on this path, so the padded copy is cheap).
        d_pad = _round_up(d_model, 128)
        tab = table if d_pad == d_model else jnp.pad(
            table, ((0, 0), (0, d_pad - d_model)))
        # Token tile: as large as the VMEM budget allows (amortizes ~0.35us of
        # per-grid-step overhead and fills the MXU M dimension).
        resident = 2 * vocab * d_pad * itemsize            # double-buffered table
        per_tok = 2 * d_pad * itemsize + 4 * vocab + 4 * d_pad + 8
        t_cap = max((vmem_limit - resident) // per_tok, 8)
        t = _round8_down(min(token_tile, _round8_down(t_cap), _round_up(n, 8)))
        n_pad = pl.cdiv(n, t) * t
        if n_pad != n:
            ids_flat = jnp.pad(ids_flat, (0, n_pad - n))
        out = _embed_matmul(ids_flat, tab, t=t, scale=scale,
                            vmem_limit=vmem_limit)
        out = out[:n, :d_model]
    else:
        # VMEM per token row: 2 gather slots + 2 pipelined output buffers.
        per_tok = 4 * d_model * itemsize
        t_cap = max((vmem_limit // 2) // per_tok, 8)       # leave headroom
        t = _round8_down(min(token_tile, _round8_down(t_cap), _round_up(n, 8)))
        if vocab >= 8:
            # The aggregate DMA-wait descriptor reads table[:t]; keep t <= vocab.
            t = min(t, _round8_down(vocab))
        n_pad = pl.cdiv(n, t) * t
        if n_pad != n:
            ids_flat = jnp.pad(ids_flat, (0, n_pad - n))
        # TODO(synk): for very large B*S (>~64K tokens) the scalar-prefetched id
        # array can overflow SMEM; switch to DMA-ing a per-tile id slice instead.
        out = _embed_gather(ids_flat, table, t=t, scale=scale,
                            vmem_limit=vmem_limit)
        out = out[:n]

    return out.reshape(b, s, d_model)


if __name__ == "__main__":
    key = jax.random.PRNGKey(0)
    k_tab, k_ids, k_tab2, k_ids2, k_tab3, k_ids3 = jax.random.split(key, 6)

    # --- Small config matching the module's toy usage (MXU one-hot path,
    #     d_model padded to a lane-dense 128 internally) ----------------------
    B, S, VOCAB, D_MODEL = 2, 8, 64, 32
    table = jax.random.normal(k_tab, (VOCAB, D_MODEL), dtype=jnp.float32)
    x = jax.random.randint(k_ids, (B, S), 0, VOCAB, dtype=jnp.int32)
    out = jax.block_until_ready(embeddings_forward(x, table))
    ref = table[x] * math.sqrt(D_MODEL)
    assert out.shape == (B, S, D_MODEL), out.shape
    assert jnp.allclose(out, ref, atol=1e-5, rtol=1e-5), "mismatch (matmul, small)"

    # --- Mid-size vocab now stays on the MXU path (raised threshold) ---------
    B2, S2, VOCAB2, D_MODEL2 = 2, 64, 2048, 128
    table2 = jax.random.normal(k_tab2, (VOCAB2, D_MODEL2), dtype=jnp.float32)
    x2 = jax.random.randint(k_ids2, (B2, S2), 0, VOCAB2, dtype=jnp.int32)
    out2 = jax.block_until_ready(embeddings_forward(x2, table2))
    ref2 = table2[x2] * math.sqrt(D_MODEL2)
    assert out2.shape == (B2, S2, D_MODEL2), out2.shape
    assert jnp.allclose(out2, ref2, atol=1e-5, rtol=1e-5), "mismatch (matmul, mid)"

    # --- Large vocab exercises the double-buffered HBM row-gather path -------
    B3, S3, VOCAB3, D_MODEL3 = 2, 256, 8192, 256
    table3 = jax.random.normal(k_tab3, (VOCAB3, D_MODEL3), dtype=jnp.float32)
    x3 = jax.random.randint(k_ids3, (B3, S3), 0, VOCAB3, dtype=jnp.int32)
    out3 = jax.block_until_ready(embeddings_forward(x3, table3))
    ref3 = table3[x3] * math.sqrt(D_MODEL3)
    assert out3.shape == (B3, S3, D_MODEL3), out3.shape
    assert jnp.allclose(out3, ref3, atol=1e-5, rtol=1e-5), "mismatch (gather path)"

    print("KERNEL_OK")
</pallas_src>

<mosaic_0001>
module attributes {stable_mosaic.version = 11 : i64} {
  func.func @_embed_matmul_kernel(%arg0: i32, %arg1: memref<16x1xi32, #tpu.memory_space<vmem>>, %arg2: memref<64x128xf32, #tpu.memory_space<vmem>>, %arg3: memref<16x128xf32, #tpu.memory_space<vmem>>) attributes {dimension_semantics = [#tpu.dimension_semantics<parallel>], iteration_bounds = array<i64: 1>, scalar_prefetch = 0 : i64, scratch_operands = 0 : i64, tpu.core_type = #tpu.core_type<tc>, window_params = [{transform_indices = @transform_0, window_bounds = array<i64: 16, 1>}, {pipeline_mode = #tpu.pipeline_mode<synchronous>, transform_indices = @transform_1, window_bounds = array<i64: 64, 128>}, {transform_indices = @transform_2, window_bounds = array<i64: 16, 128>}]} {
    %c0 = arith.constant 0 : index
    %c0_0 = arith.constant 0 : index
    %0 = vector.load %arg1[%c0, %c0_0] : memref<16x1xi32, #tpu.memory_space<vmem>>, vector<16x1xi32>
    %1 = tpu.iota {dimensions = array<i32: 1>} : vector<16x64xi32>
    %2 = vector.broadcast %0 : vector<16x1xi32> to vector<16x64xi32>
    %3 = arith.cmpi eq, %1, %2 : vector<16x64xi32>
    %cst = arith.constant 5.65685415 : f32
    %cst_1 = arith.constant 0.000000e+00 : f32
    %4 = vector.broadcast %cst : f32 to vector<16x64xf32>
    %5 = vector.broadcast %cst_1 : f32 to vector<16x64xf32>
    %6 = arith.select %3, %4, %5 : vector<16x64xi1>, vector<16x64xf32>
    %c0_2 = arith.constant 0 : index
    %c0_3 = arith.constant 0 : index
    %7 = vector.load %arg2[%c0_2, %c0_3] : memref<64x128xf32, #tpu.memory_space<vmem>>, vector<64x128xf32>
    %cst_4 = arith.constant dense<0.000000e+00> : vector<16x128xf32>
    %8 = tpu.matmul %6, %7, %cst_4 {dimension_numbers = #tpu.dot_dimension_numbers<[1], [0], [0], [1], [0, 0, 1, 1], [], []>} : vector<16x64xf32>, vector<64x128xf32>, vector<16x128xf32> -> vector<16x128xf32>
    %c0_5 = arith.constant 0 : index
    %c0_6 = arith.constant 0 : index
    %9 = vector.load %arg3[%c0_5, %c0_6] : memref<16x128xf32, #tpu.memory_space<vmem>>, vector<16x128xf32>
    tpu.vector_store %arg3[%c0_5, %c0_6], %8 {strides = array<i32>} : memref<16x128xf32, #tpu.memory_space<vmem>>, vector<16x128xf32>,
    return
  }
  func.func @transform_0(%arg0: i32) -> (i32, i32) {
    %c0_i32 = arith.constant 0 : i32
    %c0_i32_0 = arith.constant 0 : i32
    return %arg0, %c0_i32 : i32, i32
  }
  func.func @transform_1(%arg0: i32) -> (i32, i32) {
    %c0_i32 = arith.constant 0 : i32
    %c0_i32_0 = arith.constant 0 : i32
    %c0_i32_1 = arith.constant 0 : i32
    return %c0_i32, %c0_i32_0 : i32, i32
  }
  func.func @transform_2(%arg0: i32) -> (i32, i32) {
    %c0_i32 = arith.constant 0 : i32
    %c0_i32_0 = arith.constant 0 : i32
    return %arg0, %c0_i32 : i32, i32
  }
}

</mosaic_0001>

<bundles_post_ra>
// kernel: tpu_custom_call.1
= control target key start
LH: loop header
LB: loop body
LE: loop exit
PB: predicated region body
PF: predicated region fallthrough
CT: control target
= control target key end

     0   :  { %7 = vsyncpa [#allocation3], 0  ;;  %s308_s0 = inlined_call_operand.vmem [shape: s32[16,1], index: 0, kind: input, shape index: {}]   ;;  %s309_s1 = inlined_call_operand.hbm [shape: f32[64,128], index: 1, kind: input, shape index: {}]   ;;  %s310_s2 = inlined_call_operand.hbm [shape: f32[16,128], index: 2, kind: output, shape index: {}]  }
   0x1   :  { %8 = vsyncpa [#allocation4], 0  ;;  %s251_s9 = smov [#allocation2]   ;;  %s203_s13 = scalar_lea.hbm %s309_s1, 1024 }
   0x2   :  { %s16_s10 = sshll.u32 %s251_s9, 4  ;;  %p204_p0 = scmp.ne.s32.totalorder %s309_s1, %s203_s13  ;;  %s17_s10 = int_to_ptr.vmem [resolvable:$true] %s16_s10 }
   0x3   :  { %p207_p1 = scmp.lt.u32.totalorder %s203_s13, %s309_s1 }
   0x5   :  { %p209_p2 = pnand %p207_p1, %p204_p0 }
   0x7   :  { %212 = shalt.err (!%p209_p2)
}
   0x8   :  { %s213_s18 = scalar_lea.vmem %s17_s10, 1024  ;;  %p218_p4 = scmp.lt.s32.totalorder %s17_s10, %s17_s10 }
   0x9   :  { %p214_p3 = scmp.ne.s32.totalorder %s17_s10, %s213_s18  ;;  %p219_p5 = scmp.lt.s32.totalorder %s213_s18, %s213_s18 }
   0xb   :  { %p220_p6 = por %p219_p5, %p218_p4 }
   0xd   :  { %p221_p7 = pnand %p220_p6, %p214_p3 }
   0xf   :  { %224 = shalt.err (!%p221_p7)
}
  0x10   :  { %s252_s19 = smov 128   ;;  %s253_s20 = smov 8  }
  0x11   :  { %22 = dma.hbm_to_vmem [thread:$0]  %s309_s1, 1024, %s17_s10, [#allocation3], %s252_s19, %s252_s19, %s253_s20  }
  0x12   :  { %247 = dma.done.wait [#allocation3], 1024  }
  0x13   :  { %248 = vsyncadd [#allocation3], 4294966272  ;;  %v254_v0 = vmov 0   ;;  %v26_v1 = vld [vmem:[%s308_s0] sm:$0xff]  ;;  %v41_v3 = vld [vmem:[#allocation2 + $0x8] sm:$0xff]  ;;  %v28_v15 = vlaneseq  ;;  %vm48_vm0 = vcmask 523264  }
  0x14   :  { %202 = vset.pattern.permute.xlu0 %v254_v0  ;;  %v40_v2 = vld [vmem:[#allocation2] sm:$0xff]  ;;  %v42_v4 = vld [vmem:[#allocation2 + $0x10] sm:$0xff]  ;;  %v43_v5 = vld [vmem:[#allocation2 + $0x18] sm:$0xff]  ;;  %v255_v18 = vmov 0.0  }
  0x15   :  { %31 = vperm.xlu0 %202, %v26_v1   ;;  %v27_v6 = vld [vmem:[%s308_s0 + $0x8] sm:$0xff]  ;;  %v180_v7 = vpack.c.bf16 %v41_v3, %v40_v2  ;;  %v184_v8 = vpack.c.bf16 %v43_v5, %v42_v4  ;;  %v44_v9 = vld [vmem:[#allocation2 + $0x20] sm:$0xff]  ;;  %v46_v12 = vld [vmem:[#allocation2 + $0x30] sm:$0xff]  ;;  %v29_v16 = vand.u32 127, %v28_v15  ;;  %s256_s0 = smov [#allocation5]  }
  0x16   :  { %v45_v10 = vld [vmem:[#allocation2 + $0x28] sm:$0xff]  ;;  %v47_v13 = vld [vmem:[#allocation2 + $0x38] sm:$0xff]  ;;  %s137_s1 = sshll.u32 %s256_s0, 4  ;;  %s138_s1 = int_to_ptr.vmem [resolvable:$true] %s137_s1 }
  0x17   :  { %181 = vmatprep.subr.bf16.mxu0 %v180_v7  ;;  %v188_v11 = vpack.c.bf16 %v45_v10, %v44_v9  ;;  %v192_v14 = vpack.c.bf16 %v47_v13, %v46_v12  ;;  %s225_s27 = scalar_lea.vmem %s138_s1, 256  ;;  %p230_p9 = scmp.lt.s32.totalorder %s138_s1, %s138_s1 }
  0x18   :  { %183 = vmatpush3.bf16.msra.mxu0 %v180_v7  ;;  %p226_p8 = scmp.ne.s32.totalorder %s138_s1, %s225_s27  ;;  %p231_p10 = scmp.lt.s32.totalorder %s225_s27, %s225_s27 }
  0x19   :  { %34 = vperm.xlu0 %202, %v27_v6   ;;  %185 = vmatprep.subr.bf16.mxu0 %v184_v8 }
  0x1a   :  { %p232_p11 = por %p231_p10, %p230_p9 }
  0x1c   :  { %187 = vmatpush3.bf16.msra.mxu0 %v184_v8  ;;  %p233_p12 = pnand %p232_p11, %p226_p8 }
  0x1d   :  { %189 = vmatprep.subr.bf16.mxu0 %v188_v11 }
  0x20   :  { %191 = vmatpush3.bf16.msra.mxu0 %v188_v11 }
  0x21   :  { %193 = vmatprep.subr.bf16.mxu0 %v192_v14 }
  0x24   :  { %195 = vmatpush3.bf16.msra.mxu0 %v192_v14 }
  0x94   :  { %v32_v17 = vpop.permute.xlu0 %31 }
  0x95   :  { %vm36_vm1 = vcmp.eq.s32.totalorder %v29_v16, %v32_v17 }
  0x96   :  { %v38_v19 = vsel %vm36_vm1, 5.656854, %v255_v18 }
  0x97   :  { %177 = vmatprep.mubr.msk.f32.mxu0 %vm48_vm0, %v38_v19 }
  0x98   :  { %v35_v20 = vpop.permute.xlu0 %34 }
  0x99   :  { %vm37_vm2 = vcmp.eq.s32.totalorder %v29_v16, %v35_v20 }
  0x9a   :  { %v39_v21 = vsel %vm37_vm2, 5.656854, %v255_v18 }
  0x9b   :  { %178 = vmatmul.mubr.msk.f32.vlgmr.msra.gmra.mrb[0].mxu0 %vm48_vm0, %v39_v21 }
 0x16e   :  { %v179_v22 = vpop.f32.mrb[0].mxu0 }
 0x16f   :  { %131 = vst [vmem:[#allocation5 + $0x8] sm:$0xff] %v179_v22  ;;  %v121_v23 = vpop.f32.mrb[1].mxu0 }
 0x170   :  { %130 = vst [vmem:[#allocation5] sm:$0xff] %v121_v23 }
 0x171   :  { %236 = shalt.err (!%p233_p12)
}
 0x172   :  { %s237_s30 = scalar_lea.hbm %s310_s2, 256 }
 0x173   :  { %p238_p13 = scmp.ne.s32.totalorder %s310_s2, %s237_s30  ;;  %p241_p0 = scmp.lt.u32.totalorder %s237_s30, %s310_s2 }
 0x175   :  { %p243_p1 = pnand %p241_p0, %p238_p13 }
 0x177   :  { %246 = shalt.err (!%p243_p1)
}
 0x178   :  { %143 = dma.vmem_to_hbm [thread:$0]  %s138_s1, 256, %s310_s2, [#allocation4], %s252_s19, %s252_s19, %s253_s20  }
 0x179   :  { %249 = dma.done.wait [#allocation4], 256  }
 0x17a   :  { %250 = vsyncadd [#allocation4], 4294967040 }
 0x17b   :  { %147 = vsyncpa [#allocation3], 1 }
 0x17c   :  { %148 = vsyncpa [#allocation4], 1 }

</bundles_post_ra>
